<compile_context>
chip_gen: v5e
topology: v5e:2x2
jax: 0.10.0
libtpu: 0.0.40
codegen_flags: <defaults>
</compile_context>

<pallas_src>
import jax
import jax.numpy as jnp
from jax import lax
from jax.experimental import pallas as pl
from jax.experimental.pallas import tpu as pltpu


def _round_up(x, m):
    return (x + m - 1) // m * m


def _tcn_kernel(x_ref, w_ref, scale_ref, shift_ref, o_ref):
    # x_ref   : (kc_pad,    l_tile)  bf16  im2col tile (tap-major stacked channels)
    # w_ref   : (c_out_pad, kc_pad)  bf16  effective weight (all K taps fused)
    # scale   : (c_out_pad, 1)       f32   gamma / sqrt(var + eps)
    # shift   : (c_out_pad, 1)       f32   (conv_bias - mean) * scale + beta
    # o_ref   : (c_out_pad, l_tile)  out_dtype
    acc = jnp.dot(w_ref[...], x_ref[...], preferred_element_type=jnp.float32)
    y = acc * scale_ref[...] + shift_ref[...]                # conv-bias + BN folded
    o_ref[...] = jnp.maximum(y, 0.0).astype(o_ref.dtype)     # ReLU; eval dropout = id


def temporal_conv_block(x, weight, bias, bn_gamma, bn_beta, bn_mean, bn_var,
                        *, stride, padding, dilation, eps=1e-5,
                        l_tile=1024, compute_dtype=jnp.bfloat16,
                        out_dtype=jnp.float32):
    """x: (N, C_in, L) f32.  weight: (C_out, C_in, K).  Returns (N, C_out, L_out)."""
    n, c_in, length = x.shape
    c_out, _, k = weight.shape
    l_out = (length + 2 * padding - dilation * (k - 1) - 1) // stride + 1

    # ---------------- wrapper-side glue (plain JAX, bf16-first) ----------------
    # Zero padding + strided/dilated gather (im2col), built directly in bf16 so
    # the K-duplicated intermediate never exists in f32.
    x_pad = jnp.pad(x, ((0, 0), (0, 0), (padding, padding))).astype(compute_dtype)
    span = stride * (l_out - 1) + 1
    taps = [lax.slice_in_dim(x_pad, t * dilation, t * dilation + span, stride, axis=2)
            for t in range(k)]
    x_col = jnp.concatenate(taps, axis=1)                   # (N, K*C_in, L_out) bf16

    # Effective weight: (C_out, K*C_in), tap-major to match x_col stacking.
    w_eff = jnp.transpose(weight, (0, 2, 1)).reshape(c_out, k * c_in)

    # Fold conv bias + BatchNorm(eval) into per-channel scale/shift (f32).
    scale = bn_gamma / jnp.sqrt(bn_var + eps)                # (C_out,)
    shift = (bias - bn_mean) * scale + bn_beta               # (C_out,)

    # ---------------- TPU-friendly padding / tiling ----------------
    kc = k * c_in
    kc_pad = _round_up(kc, 16)                # bf16 sublane packing
    c_out_pad = _round_up(c_out, 16)          # bf16 sublane packing of weight rows
    l_tile = max(256, (int(l_tile) // 128) * 128)   # lane-dense, 128-aligned
    l_out_pad = _round_up(l_out, 128)
    if l_out_pad <= l_tile:
        l_tile = l_out_pad                    # single lane-dense tile per batch
    else:
        l_out_pad = _round_up(l_out, l_tile)

    x_col = jnp.pad(x_col, ((0, 0), (0, kc_pad - kc), (0, l_out_pad - l_out)))
    w_eff = jnp.pad(w_eff, ((0, c_out_pad - c_out),
                            (0, kc_pad - kc))).astype(compute_dtype)
    scale = jnp.pad(scale, (0, c_out_pad - c_out)).reshape(c_out_pad, 1).astype(jnp.float32)
    shift = jnp.pad(shift, (0, c_out_pad - c_out)).reshape(c_out_pad, 1).astype(jnp.float32)

    grid = (n, l_out_pad // l_tile)

    # VMEM budget: double-buffered bf16 input tiles + resident bf16 weights +
    # double-buffered output tiles (+ margin).  Floor 32 MiB, cap 64 MiB (v7x).
    out_itemsize = jnp.dtype(out_dtype).itemsize
    vmem_needed = (2 * kc_pad * l_tile * 2
                   + 2 * c_out_pad * kc_pad * 2
                   + 4 * c_out_pad * 4
                   + 2 * c_out_pad * l_tile * out_itemsize)
    vmem_limit = int(min(max(vmem_needed + (4 << 20), 32 << 20), 64 << 20))

    out = pl.pallas_call(
        _tcn_kernel,
        out_shape=jax.ShapeDtypeStruct((n, c_out_pad, l_out_pad), out_dtype),
        grid_spec=pltpu.PrefetchScalarGridSpec(
            num_scalar_prefetch=0,
            grid=grid,
            in_specs=[
                pl.BlockSpec((pl.Squeezed(), kc_pad, l_tile),
                             lambda b, j: (b, 0, j)),              # im2col tile
                pl.BlockSpec((c_out_pad, kc_pad), lambda b, j: (0, 0)),  # weights
                pl.BlockSpec((c_out_pad, 1), lambda b, j: (0, 0)),       # BN scale
                pl.BlockSpec((c_out_pad, 1), lambda b, j: (0, 0)),       # BN shift
            ],
            out_specs=pl.BlockSpec((pl.Squeezed(), c_out_pad, l_tile),
                                   lambda b, j: (b, 0, j)),
        ),
        compiler_params=pltpu.CompilerParams(
            dimension_semantics=("parallel", "parallel"),
            vmem_limit_bytes=vmem_limit),
    )(x_col, w_eff, scale, shift)

    # Output is already (N, C_out_pad, L_out_pad) -> just slice off padding.
    return out[:, :c_out, :l_out]


def _reference(x, weight, bias, bn_gamma, bn_beta, bn_mean, bn_var,
               *, stride, padding, dilation, eps=1e-5,
               compute_dtype=jnp.bfloat16):
    # Plain-JAX reference with the same bf16 input precision as the kernel.
    xr = x.astype(compute_dtype).astype(jnp.float32)
    wr = weight.astype(compute_dtype).astype(jnp.float32)
    y = lax.conv_general_dilated(
        xr, wr, window_strides=(stride,), padding=[(padding, padding)],
        rhs_dilation=(dilation,),
        dimension_numbers=("NCH", "OIH", "NCH"))
    y = y + bias[None, :, None]
    y = (y - bn_mean[None, :, None]) / jnp.sqrt(bn_var[None, :, None] + eps)
    y = y * bn_gamma[None, :, None] + bn_beta[None, :, None]
    return jnp.maximum(y, 0.0)


if __name__ == "__main__":
    # Small shapes consistent with the module's forward: x is (N, C_in, L).
    N, C_IN, C_OUT, L = 2, 4, 8, 16
    K = 3

    key = jax.random.PRNGKey(0)
    kx, kw, kb = jax.random.split(key, 3)
    x = jax.random.normal(kx, (N, C_IN, L), dtype=jnp.float32)

    # Deterministic parameter init (shapes per nn.Conv1d / nn.BatchNorm1d).
    fan_in = C_IN * K
    bound = 1.0 / jnp.sqrt(fan_in)
    weight = jax.random.uniform(kw, (C_OUT, C_IN, K), jnp.float32, -bound, bound)
    bias = jax.random.uniform(kb, (C_OUT,), jnp.float32, -bound, bound)
    bn_gamma = jnp.ones((C_OUT,), jnp.float32)
    bn_beta = jnp.zeros((C_OUT,), jnp.float32)
    bn_mean = jnp.zeros((C_OUT,), jnp.float32)
    bn_var = jnp.ones((C_OUT,), jnp.float32)

    # Exercise two configs: a dilated "same-length" TCN block and a strided one.
    configs = [
        dict(stride=1, padding=2, dilation=2),
        dict(stride=2, padding=1, dilation=1),
    ]
    for cfg in configs:
        out = temporal_conv_block(
            x, weight, bias, bn_gamma, bn_beta, bn_mean, bn_var, **cfg)
        out = jax.block_until_ready(out)
        ref = _reference(
            x, weight, bias, bn_gamma, bn_beta, bn_mean, bn_var, **cfg)
        assert out.shape == ref.shape, (cfg, out.shape, ref.shape)
        assert jnp.allclose(out, ref, atol=1e-4, rtol=1e-4), \
            (cfg, float(jnp.max(jnp.abs(out - ref))))

    print("KERNEL_OK")
</pallas_src>

<mosaic_0001>
module attributes {stable_mosaic.version = 11 : i64} {
  func.func @_tcn_kernel(%arg0: i32, %arg1: i32, %arg2: memref<1x16x128xbf16, #tpu.memory_space<vmem>>, %arg3: memref<16x16xbf16, #tpu.memory_space<vmem>>, %arg4: memref<16x1xf32, #tpu.memory_space<vmem>>, %arg5: memref<16x1xf32, #tpu.memory_space<vmem>>, %arg6: memref<1x16x128xf32, #tpu.memory_space<vmem>>) attributes {dimension_semantics = [#tpu.dimension_semantics<parallel>, #tpu.dimension_semantics<parallel>], iteration_bounds = array<i64: 2, 1>, scalar_prefetch = 0 : i64, scratch_operands = 0 : i64, tpu.core_type = #tpu.core_type<tc>, window_params = [{transform_indices = @transform_0, window_bounds = array<i64: 1, 16, 128>}, {pipeline_mode = #tpu.pipeline_mode<synchronous>, transform_indices = @transform_1, window_bounds = array<i64: 16, 16>}, {pipeline_mode = #tpu.pipeline_mode<synchronous>, transform_indices = @transform_2, window_bounds = array<i64: 16, 1>}, {pipeline_mode = #tpu.pipeline_mode<synchronous>, transform_indices = @transform_3, window_bounds = array<i64: 16, 1>}, {transform_indices = @transform_4, window_bounds = array<i64: 1, 16, 128>}]} {
    %c0 = arith.constant 0 : index
    %c0_0 = arith.constant 0 : index
    %0 = vector.load %arg3[%c0, %c0_0] : memref<16x16xbf16, #tpu.memory_space<vmem>>, vector<16x16xbf16>
    %c0_1 = arith.constant 0 : index
    %c0_2 = arith.constant 0 : index
    %c0_3 = arith.constant 0 : index
    %1 = vector.load %arg2[%c0_1, %c0_2, %c0_3] : memref<1x16x128xbf16, #tpu.memory_space<vmem>>, vector<1x16x128xbf16>
    %2 = vector.shape_cast %1 : vector<1x16x128xbf16> to vector<16x128xbf16>
    %cst = arith.constant dense<0.000000e+00> : vector<16x128xf32>
    %3 = tpu.matmul %0, %2, %cst {dimension_numbers = #tpu.dot_dimension_numbers<[1], [0], [0], [1], [0, 0, 1, 1], [], []>} : vector<16x16xbf16>, vector<16x128xbf16>, vector<16x128xf32> -> vector<16x128xf32>
    %c0_4 = arith.constant 0 : index
    %c0_5 = arith.constant 0 : index
    %4 = vector.load %arg4[%c0_4, %c0_5] : memref<16x1xf32, #tpu.memory_space<vmem>>, vector<16x1xf32>
    %5 = vector.broadcast %4 : vector<16x1xf32> to vector<16x128xf32>
    %6 = arith.mulf %3, %5 : vector<16x128xf32>
    %c0_6 = arith.constant 0 : index
    %c0_7 = arith.constant 0 : index
    %7 = vector.load %arg5[%c0_6, %c0_7] : memref<16x1xf32, #tpu.memory_space<vmem>>, vector<16x1xf32>
    %8 = vector.broadcast %7 : vector<16x1xf32> to vector<16x128xf32>
    %9 = arith.addf %6, %8 : vector<16x128xf32>
    %cst_8 = arith.constant 0.000000e+00 : f32
    %10 = vector.broadcast %cst_8 : f32 to vector<16x128xf32>
    %11 = arith.maximumf %9, %10 : vector<16x128xf32>
    %c0_9 = arith.constant 0 : index
    %c0_10 = arith.constant 0 : index
    %c0_11 = arith.constant 0 : index
    %12 = vector.load %arg6[%c0_9, %c0_10, %c0_11] : memref<1x16x128xf32, #tpu.memory_space<vmem>>, vector<1x16x128xf32>
    %13 = vector.shape_cast %12 : vector<1x16x128xf32> to vector<16x128xf32>
    %14 = vector.shape_cast %11 : vector<16x128xf32> to vector<1x16x128xf32>
    tpu.vector_store %arg6[%c0_9, %c0_10, %c0_11], %14 {strides = array<i32>} : memref<1x16x128xf32, #tpu.memory_space<vmem>>, vector<1x16x128xf32>,
    return
  }
  func.func @transform_0(%arg0: i32, %arg1: i32) -> (i32, i32, i32) {
    %c0_i32 = arith.constant 0 : i32
    %c0_i32_0 = arith.constant 0 : i32
    return %arg0, %c0_i32, %arg1 : i32, i32, i32
  }
  func.func @transform_1(%arg0: i32, %arg1: i32) -> (i32, i32) {
    %c0_i32 = arith.constant 0 : i32
    %c0_i32_0 = arith.constant 0 : i32
    %c0_i32_1 = arith.constant 0 : i32
    return %c0_i32, %c0_i32_0 : i32, i32
  }
  func.func @transform_2(%arg0: i32, %arg1: i32) -> (i32, i32) {
    %c0_i32 = arith.constant 0 : i32
    %c0_i32_0 = arith.constant 0 : i32
    %c0_i32_1 = arith.constant 0 : i32
    return %c0_i32, %c0_i32_0 : i32, i32
  }
  func.func @transform_3(%arg0: i32, %arg1: i32) -> (i32, i32) {
    %c0_i32 = arith.constant 0 : i32
    %c0_i32_0 = arith.constant 0 : i32
    %c0_i32_1 = arith.constant 0 : i32
    return %c0_i32, %c0_i32_0 : i32, i32
  }
  func.func @transform_4(%arg0: i32, %arg1: i32) -> (i32, i32, i32) {
    %c0_i32 = arith.constant 0 : i32
    %c0_i32_0 = arith.constant 0 : i32
    return %arg0, %c0_i32, %arg1 : i32, i32, i32
  }
}

</mosaic_0001>

<bundles_post_ra>
// kernel: tpu_custom_call.1
= control target key start
LH: loop header
LB: loop body
LE: loop exit
PB: predicated region body
PF: predicated region fallthrough
CT: control target
= control target key end

     0   :  { %9 = vsyncpa [#allocation3], 0  ;;  %s688_s0 = inlined_call_operand.vmem [shape: bf16[2,16,128], index: 0, kind: input, shape index: {}]   ;;  %s689_s1 = inlined_call_operand.vmem [shape: bf16[16,16], index: 1, kind: input, shape index: {}]   ;;  %s690_s2 = inlined_call_operand.vmem [shape: f32[16,1], index: 2, kind: input, shape index: {}]   ;;  %s691_s3 = inlined_call_operand.vmem [shape: f32[16,1], index: 3, kind: input, shape index: {}]   ;;  %s692_s4 = inlined_call_operand.hbm [shape: f32[2,16,128], index: 4, kind: output, shape index: {}]  }
   0x1   :  { %11 = vsyncpa [#allocation3 + $0x1], 0  ;;  %s576_s15 = smov 0   ;;  %s578_s16 = smov 0  }
   0x2   :  { %s580_s17 = smov 0   ;;  %s582_s18 = smov 0  }
   0x3   :  { %s584_s19 = smov 0   ;;  %s586_s20 = smov 0  }
   0x4 LB: > { %s382_s21 = sadd.s32 4294967295, %s546_s20   ;;  %s383_s22 = sadd.s32 4294967294, %s546_s20   ;;  %s546_s20 = sphi %s586_s20, %s17_s20   ;;  %s542_s19 = sphi %s584_s19, %s699_s19   ;;  %s538_s18 = sphi %s582_s18, %s698_s18   ;;  %s534_s17 = sphi %s580_s17, %s697_s17   ;;  %s530_s16 = sphi %s578_s16, %s696_s16   ;;  %s526_s15 = sphi %s576_s15, %s695_s15  }
   0x5   : > { %s29_s23 = sadd.s32 1, %s542_s19  ;;  %s129_s24 = sadd.s32 1, %s534_s17 }
   0x6   : > { %p31_p0 = scmp.ge.s32.totalorder %s29_s23, 2  ;;  %p139_p1 = scmp.ne.s32.totalorder %s534_s17, %s530_s16 }
   0x7   : > { %p140_p2 = scmp.eq.s32.totalorder %s382_s21, 1  ;;  %p145_p3 = scmp.ne.s32.totalorder %s530_s16, %s526_s15 }
   0x8   : > { %s701_s23 = smov (%p31_p0, %s29_s23), 0  ;;  %p146_p5 = scmp.eq.s32.totalorder %s383_s22, 1 }
   0x9   : > { %p616_p4 = por %p140_p2, %p139_p1  ;;  %s124_s26 = ssub.s32 %s542_s19, %s701_s23 }
   0xa   : > { %p386_p6 = scmp.ge.s32.totalorder %s546_s20, 1  ;;  %p127_p7 = scmp.eq.s32.totalorder %s124_s26, 0 }
   0xb   : > { %p623_p8 = por %p146_p5, %p145_p3  ;;  %p184_p9 = scmp.lt.s32.totalorder %s546_s20, 3 }
   0xc   : > { %s629_s28 = scalar_select %p127_p7, %s534_s17, %s129_s24  }
   0xd   : > { %p185_p10 = pnand %p386_p6, %p184_p9 }
   0xe   : > { %p213_p11 = scmp.lt.s32.totalorder (!%p185_p10), %s538_s18, 1  ;;  %s210_s26 = sand.u32 (!%p185_p10), 1, %s530_s16  }
   0xf   : > { %188 = sbr.rel (%p185_p10) target bundleno = 172 (0xac), region = 36  ;;  %s387_s29 = sshll.u32 (!%p185_p10), %s210_s26, 4 }
  0x10   : > { %s407_s30 = sshll.u32 (!%p185_p10), %s538_s18, 4  ;;  %s488_s21 = scalar_lea.hbm (!%p185_p10), %s692_s4, 32 }
  0x14   : > { %v255_v0 = vld [vmem:[%s690_s2] sm:$0xff]  ;;  %v548_v2 = vmov 0   ;;  %s214_s7 = scalar_select %p213_p11, %s538_s18, 1  ;;  %v256_v5 = vld [vmem:[%s690_s2 + $0x8] sm:$0xff]  ;;  %vm237_vm0 = vcmask 130048  }
  0x15   : > { %v269_v1 = vld [vmem:[%s691_s3] sm:$0xff]  ;;  %466 = vset.pattern.permute.xlu0 %v548_v2  ;;  %467 = vset.pattern.permute.xlu1 %v548_v2  ;;  %v270_v6 = vld [vmem:[%s691_s3 + $0x8] sm:$0xff]  ;;  %s288_s18 = scalar_lea.sflag [#allocation3], %s210_s26 }
  0x16   : > { %259 = vperm.xlu0 %466, %v255_v0   ;;  %273 = vperm.xlu1 %467, %v269_v1   ;;  %s404_s8 = sshll.u32 %s214_s7, 3  ;;  %v405_v4 = vld [vmem:[%s689_s1] sm:$0xff]  ;;  %s300_s7 = scalar_lea.hbm %s692_s4, %s407_s30 }
  0x17   : > { %s220_s11 = scalar_lea.vmem %s688_s0, %s404_s8  ;;  %s212_s8 = scalar_lea.vmem [#allocation2], %s387_s29 }
  0x18   : > { %v406_v3 = vld [vmem:[%s220_s11] sm:$0xff]  ;;  %s301_s9 = sshll.u32 %s212_s8, 4  ;;  %s303_s10 = sshll.u32 %s300_s7, 4  ;;  %s302_s9 = int_to_ptr.vmem [resolvable:$true] %s301_s9  ;;  %s304_s10 = int_to_ptr.hbm [resolvable:$true] %s303_s10 }
  0x19   : > { %248 = vmatpush.bf16.msra.mxu0 %v406_v3  ;;  %s482_s11 = sshra.s32 %s304_s10, 4  ;;  %s483_s11 = int_to_ptr.hbm [resolvable:$true] %s482_s11 }
  0x1a   : > { %s484_s12 = scalar_lea.hbm %s483_s11, 16  ;;  %p489_p1 = scmp.lt.s32.totalorder %s483_s11, %s692_s4 }
  0x1b   : > { %p485_p12 = scmp.ne.s32.totalorder %s483_s11, %s484_s12  ;;  %p490_p2 = scmp.lt.s32.totalorder %s488_s21, %s484_s12 }
  0x1c   : > { %398 = vmatmul.msk.bf16.vlgmr.msra.gmra.mxu0 %vm237_vm0, %v405_v4 }
  0x1d   : > { %p486_p13 = pnand %p485_p12, %p616_p4  ;;  %p491_p3 = por %p490_p2, %p489_p1 }
  0x1e   : > { %264 = vperm.xlu0 %466, %v256_v5   ;;  %278 = vperm.xlu1 %467, %v270_v6  }
  0x1f   : > { %p487_p0 = pneg %p486_p13 }
  0x21   : > { %p492_p5 = pnand %p491_p3, %p487_p0 }
  0x88   : > { %v260_v7 = vpop.permute.xlu0 %259  ;;  %v274_v8 = vpop.permute.xlu1 %273 }
  0x90   : > { %v265_v13 = vpop.permute.xlu0 %264  ;;  %v279_v16 = vpop.permute.xlu1 %278 }
  0x99   : > { %v250_v9 = vpop.f32.mrf.mxu0 }
  0x9a   : > { %v267_v10 = vmul.f32 %v260_v7, %v250_v9 }
  0x9c   : > { %v281_v11 = vadd.f32 %v274_v8, %v267_v10 }
  0x9e   : > { %v283_v12 = vmax.f32 %v281_v11, 0.0 }
  0xa0   : > { %285 = vst [vmem:[%s212_s8] sm:$0xff] %v283_v12 }
  0xa1   : > { %v252_v14 = vpop.f32.mrf.mxu0 }
  0xa2   : > { %v268_v15 = vmul.f32 %v265_v13, %v252_v14 }
  0xa4   : > { %v282_v17 = vadd.f32 %v279_v16, %v268_v15 }
  0xa6   : > { %v284_v18 = vmax.f32 %v282_v17, 0.0 }
  0xa8   : > { %286 = vst [vmem:[%s212_s8 + $0x8] sm:$0xff] %v284_v18 }
  0xa9   : > { %495 = shalt.err (!%p492_p5)
}
  0xaa   : > { %s549_s26 = smov 128   ;;  %s550_s29 = smov 8  }
  0xab   : > { %408 = dma.vmem_to_hbm [thread:$0]  (%p616_p4), %s302_s9, 256, %s304_s10, %s288_s18, %s549_s26, %s549_s26, %s550_s29  }
  0xac PF: > { %p414_p6 = scmp.ge.s32.totalorder %s546_s20, 2  ;;  %s318_s30 = sand.u32 1, %s526_s15  }
  0xad   : > { %s319_s5 = scalar_lea.sflag [#allocation3], %s318_s30 }
  0xae   : > { %p411_p7 = pnand %p414_p6, %p623_p8 }
  0xb0   : > { %p412_p9 = pneg %p411_p7 }
  0xb2   : > { %521 = dma.done.wait (%p412_p9), %s319_s5, 256  }
  0xb3   : > { %523 = vsyncadd (%p412_p9), %s319_s5, 4294967040  ;;  %s17_s20 = sadd.s32 1, %s546_s20   ;;  %s695_s15 = smov %s530_s16 }
  0xb4   : > { %p14_p10 = scmp.ge.s32.totalorder %s17_s20, 4   ;;  %s696_s16 = smov %s534_s17 }
  0xb5   : > { %s697_s17 = smov %s629_s28  ;;  %s698_s18 = smov %s542_s19 }
  0xb6   : > { %s699_s19 = smov %s701_s23  ;;  %16 = sbr.rel (!%p14_p10) target bundleno = 4 (0x4), region = 71 }
  0xbb   :  { %325 = vsyncpa [#allocation3], 1 }
  0xbc   :  { %327 = vsyncpa [#allocation3 + $0x1], 1 }

</bundles_post_ra>
